<compile_context>
chip_gen: v5e
topology: v5e:2x2
jax: 0.10.0
libtpu: 0.0.40
codegen_flags: <defaults>
</compile_context>

<pallas_src>
import functools

import jax
import jax.numpy as jnp
from jax.experimental import pallas as pl
from jax.experimental.pallas import tpu as pltpu

LANES = 128
SUBLANES = 8
MAX_BLOCK_ROWS = 2048          # 2048 x 128 x 4B = 1 MiB per input block
NUM_SPLITS = 2                 # leading "parallel" axis (v7x: 2 TensorCores)


def _focal_kernel(x_ref, y_ref, out_ref, acc_ref, *, gamma, n_valid,
                  block_rows, blocks_per_core):
    c = pl.program_id(0)                 # core-split index ("parallel")
    j = pl.program_id(1)                 # block index within split ("arbitrary")

    @pl.when(j == 0)
    def _():
        acc_ref[...] = jnp.zeros_like(acc_ref)

    x = x_ref[...].astype(jnp.float32)
    y = y_ref[...].astype(jnp.float32)

    # Numerically-stable BCE with logits (same formula PyTorch uses):
    #   bce = max(x, 0) - x*y + log(1 + exp(-|x|))
    bce = jnp.maximum(x, 0.0) - x * y + jnp.log1p(jnp.exp(-jnp.abs(x)))
    pt = jnp.exp(-bce)
    one_minus_pt = jnp.maximum(1.0 - pt, 0.0)   # clamp: avoid NaN from pow/log

    g = float(gamma)
    if g == int(g) and 0 <= int(g) <= 4:
        # Small integer gamma: repeated multiply (no exp/log on the EUP).
        w = jnp.ones_like(one_minus_pt)
        for _ in range(int(g)):
            w = w * one_minus_pt
    else:
        w = one_minus_pt ** g
    focal = w * bce                              # (block_rows, LANES)

    # Logical block id this step is responsible for (may overrun the array on
    # the last split; the index_map clamps the DMA, the mask zeroes the math).
    b = c * blocks_per_core + j
    block_elems = block_rows * LANES             # assumes n_valid < 2**31
    needs_mask = (b + 1) * block_elems > n_valid

    def _accum(v):
        # (block_rows,128) -> (block_rows//8, 8, 128) is tile-aligned (free);
        # sum over axis 0 is pure inter-vreg VPU adds.
        acc_ref[...] += v.reshape(block_rows // SUBLANES, SUBLANES, LANES
                                  ).sum(axis=0)

    @pl.when(needs_mask)
    def _():
        rows = jax.lax.broadcasted_iota(jnp.int32, (block_rows, LANES), 0)
        lanes = jax.lax.broadcasted_iota(jnp.int32, (block_rows, LANES), 1)
        gidx = (b * block_rows + rows) * LANES + lanes
        _accum(jnp.where(gidx < n_valid, focal, 0.0))

    @pl.when(jnp.logical_not(needs_mask))
    def _():
        _accum(focal)

    @pl.when(j == pl.num_programs(1) - 1)
    def _():
        out_ref[...] = acc_ref[...]


def focal_loss_pallas(x, y, gamma=2.0):
    """Mean binary focal loss over all elements of x (logits), y (targets)."""
    assert x.shape == y.shape
    n = x.size

    xf = jnp.ravel(x)
    yf = jnp.ravel(y)

    # Only pad (one copy pass) when n is not already a multiple of 8*128.
    tile_elems = SUBLANES * LANES
    n_pad = pl.cdiv(n, tile_elems) * tile_elems
    if n_pad != n:
        xf = jnp.pad(xf, (0, n_pad - n))
        yf = jnp.pad(yf, (0, n_pad - n))

    M = n_pad // LANES                   # multiple of 8
    x2 = xf.reshape(M, LANES)            # layout-compatible reshape (free)
    y2 = yf.reshape(M, LANES)

    block_rows = min(MAX_BLOCK_ROWS, M)  # both multiples of 8
    num_blocks = pl.cdiv(M, block_rows)
    nsplit = NUM_SPLITS if num_blocks >= NUM_SPLITS else 1
    bpc = pl.cdiv(num_blocks, nsplit)    # blocks per core

    kernel = functools.partial(
        _focal_kernel, gamma=float(gamma), n_valid=n,
        block_rows=block_rows, blocks_per_core=bpc)

    def in_map(c, j):
        # Clamp so phantom trailing steps re-read the last block (their
        # contribution is zeroed by the in-kernel mask).
        return (jnp.minimum(c * bpc + j, num_blocks - 1), 0)

    in_spec = pl.BlockSpec((block_rows, LANES), in_map)

    partials = pl.pallas_call(
        kernel,
        out_shape=jax.ShapeDtypeStruct((nsplit * SUBLANES, LANES), jnp.float32),
        grid_spec=pltpu.PrefetchScalarGridSpec(
            num_scalar_prefetch=0,
            grid=(nsplit, bpc),
            in_specs=[in_spec, in_spec],
            out_specs=pl.BlockSpec((SUBLANES, LANES), lambda c, j: (c, 0)),
            scratch_shapes=[pltpu.VMEM((SUBLANES, LANES), jnp.float32)],
        ),
        compiler_params=pltpu.CompilerParams(
            dimension_semantics=("parallel", "arbitrary")),
    )(x2, y2)

    # Tiny final cross-lane reduction (at most 2 * 8 * 128 floats) + mean.
    return jnp.sum(partials) / jnp.float32(n)


def focal_loss_ref(x, y, gamma=2.0):
    x = x.astype(jnp.float32)
    y = y.astype(jnp.float32)
    bce = jnp.maximum(x, 0.0) - x * y + jnp.log1p(jnp.exp(-jnp.abs(x)))
    pt = jnp.exp(-bce)
    return jnp.mean(((1.0 - pt) ** gamma) * bce)


if __name__ == "__main__":
    key = jax.random.PRNGKey(0)
    kx, ky = jax.random.split(key)
    # NCHW, matching the PyTorch module's expected input layout.
    x = jax.random.normal(kx, (2, 4, 16, 16), dtype=jnp.float32)
    y = (jax.random.uniform(ky, (2, 4, 16, 16)) > 0.5).astype(jnp.float32)

    loss = focal_loss_pallas(x, y, gamma=2.0)
    jax.block_until_ready(loss)

    ref = focal_loss_ref(x, y, gamma=2.0)
    assert jnp.allclose(loss, ref, rtol=1e-5, atol=1e-6), (loss, ref)
    print("KERNEL_OK")
</pallas_src>

<mosaic_0001>
module attributes {stable_mosaic.version = 11 : i64} {
  func.func @_focal_kernel(%arg0: i32, %arg1: i32, %arg2: memref<16x128xf32, #tpu.memory_space<vmem>>, %arg3: memref<16x128xf32, #tpu.memory_space<vmem>>, %arg4: memref<8x128xf32, #tpu.memory_space<vmem>>, %arg5: memref<8x128xf32, #tpu.memory_space<vmem>>) attributes {dimension_semantics = [#tpu.dimension_semantics<parallel>, #tpu.dimension_semantics<arbitrary>], iteration_bounds = array<i64: 1, 1>, scalar_prefetch = 0 : i64, scratch_operands = 1 : i64, tpu.core_type = #tpu.core_type<tc>, window_params = [{transform_indices = @transform_0, window_bounds = array<i64: 16, 128>}, {transform_indices = @transform_1, window_bounds = array<i64: 16, 128>}, {transform_indices = @transform_2, window_bounds = array<i64: 8, 128>}]} {
    %c0_i32 = arith.constant 0 : i32
    %0 = arith.cmpi eq, %arg1, %c0_i32 : i32
    %1 = arith.extui %0 : i1 to i32
    %c0_i32_0 = arith.constant 0 : i32
    %2 = arith.cmpi ne, %1, %c0_i32_0 : i32
    scf.if %2 {
      %cst_15 = arith.constant 0.000000e+00 : f32
      %39 = vector.broadcast %cst_15 : f32 to vector<8x128xf32>
      %c0_16 = arith.constant 0 : index
      %c0_17 = arith.constant 0 : index
      %40 = vector.load %arg5[%c0_16, %c0_17] : memref<8x128xf32, #tpu.memory_space<vmem>>, vector<8x128xf32>
      tpu.vector_store %arg5[%c0_16, %c0_17], %39 {strides = array<i32>} : memref<8x128xf32, #tpu.memory_space<vmem>>, vector<8x128xf32>,
    } else {
    }
    %c0 = arith.constant 0 : index
    %c0_1 = arith.constant 0 : index
    %3 = vector.load %arg2[%c0, %c0_1] : memref<16x128xf32, #tpu.memory_space<vmem>>, vector<16x128xf32>
    %c0_2 = arith.constant 0 : index
    %c0_3 = arith.constant 0 : index
    %4 = vector.load %arg3[%c0_2, %c0_3] : memref<16x128xf32, #tpu.memory_space<vmem>>, vector<16x128xf32>
    %cst = arith.constant 0.000000e+00 : f32
    %5 = vector.broadcast %cst : f32 to vector<16x128xf32>
    %6 = arith.maximumf %3, %5 : vector<16x128xf32>
    %7 = arith.mulf %3, %4 : vector<16x128xf32>
    %8 = arith.subf %6, %7 : vector<16x128xf32>
    %9 = math.absf %3 : vector<16x128xf32>
    %cst_4 = arith.constant 0.000000e+00 : f32
    %10 = vector.broadcast %cst_4 : f32 to vector<16x128xf32>
    %11 = arith.subf %10, %9 : vector<16x128xf32>
    %12 = math.exp %11 : vector<16x128xf32>
    %13 = math.log1p %12 : vector<16x128xf32>
    %14 = arith.addf %8, %13 : vector<16x128xf32>
    %cst_5 = arith.constant 0.000000e+00 : f32
    %15 = vector.broadcast %cst_5 : f32 to vector<16x128xf32>
    %16 = arith.subf %15, %14 : vector<16x128xf32>
    %17 = math.exp %16 : vector<16x128xf32>
    %cst_6 = arith.constant 1.000000e+00 : f32
    %18 = vector.broadcast %cst_6 : f32 to vector<16x128xf32>
    %19 = arith.subf %18, %17 : vector<16x128xf32>
    %cst_7 = arith.constant 0.000000e+00 : f32
    %20 = vector.broadcast %cst_7 : f32 to vector<16x128xf32>
    %21 = arith.maximumf %19, %20 : vector<16x128xf32>
    %cst_8 = arith.constant 1.000000e+00 : f32
    %22 = vector.broadcast %cst_8 : f32 to vector<16x128xf32>
    %23 = arith.mulf %22, %21 : vector<16x128xf32>
    %24 = arith.mulf %23, %21 : vector<16x128xf32>
    %25 = arith.mulf %24, %14 : vector<16x128xf32>
    %c1_i32 = arith.constant 1 : i32
    %26 = arith.muli %arg0, %c1_i32 : i32
    %27 = arith.addi %26, %arg1 : i32
    %c1_i32_9 = arith.constant 1 : i32
    %28 = arith.addi %27, %c1_i32_9 : i32
    %c2048_i32 = arith.constant 2048 : i32
    %29 = arith.muli %28, %c2048_i32 : i32
    %c2048_i32_10 = arith.constant 2048 : i32
    %30 = arith.cmpi sgt, %29, %c2048_i32_10 : i32
    %31 = arith.extui %30 : i1 to i32
    %c0_i32_11 = arith.constant 0 : i32
    %32 = arith.cmpi ne, %31, %c0_i32_11 : i32
    scf.if %32 {
      %39 = tpu.iota {dimensions = array<i32: 0>} : vector<16x128xi32>
      %40 = tpu.iota {dimensions = array<i32: 1>} : vector<16x128xi32>
      %c16_i32 = arith.constant 16 : i32
      %41 = arith.muli %27, %c16_i32 : i32
      %42 = vector.broadcast %41 : i32 to vector<16x128xi32>
      %43 = arith.addi %42, %39 : vector<16x128xi32>
      %c128_i32 = arith.constant 128 : i32
      %44 = vector.broadcast %c128_i32 : i32 to vector<16x128xi32>
      %45 = arith.muli %43, %44 : vector<16x128xi32>
      %46 = arith.addi %45, %40 : vector<16x128xi32>
      %c2048_i32_15 = arith.constant 2048 : i32
      %47 = vector.broadcast %c2048_i32_15 : i32 to vector<16x128xi32>
      %48 = arith.cmpi slt, %46, %47 : vector<16x128xi32>
      %cst_16 = arith.constant 0.000000e+00 : f32
      %49 = vector.broadcast %cst_16 : f32 to vector<16x128xf32>
      %50 = arith.select %48, %25, %49 : vector<16x128xi1>, vector<16x128xf32>
      %c0_17 = arith.constant 0 : index
      %c0_18 = arith.constant 0 : index
      %51 = vector.load %arg5[%c0_17, %c0_18] : memref<8x128xf32, #tpu.memory_space<vmem>>, vector<8x128xf32>
      %52 = vector.shape_cast %50 : vector<16x128xf32> to vector<2x8x128xf32>
      %cst_19 = arith.constant dense<0.000000e+00> : vector<8x128xf32>
      %53 = vector.multi_reduction <add>, %52, %cst_19 [0] : vector<2x8x128xf32> to vector<8x128xf32>
      %54 = arith.addf %51, %53 : vector<8x128xf32>
      %c0_20 = arith.constant 0 : index
      %c0_21 = arith.constant 0 : index
      %55 = vector.load %arg5[%c0_20, %c0_21] : memref<8x128xf32, #tpu.memory_space<vmem>>, vector<8x128xf32>
      tpu.vector_store %arg5[%c0_20, %c0_21], %54 {strides = array<i32>} : memref<8x128xf32, #tpu.memory_space<vmem>>, vector<8x128xf32>,
    } else {
    }
    %true = arith.constant true
    %33 = arith.xori %30, %true : i1
    %34 = arith.extui %33 : i1 to i32
    %c0_i32_12 = arith.constant 0 : i32
    %35 = arith.cmpi ne, %34, %c0_i32_12 : i32
    scf.if %35 {
      %c0_15 = arith.constant 0 : index
      %c0_16 = arith.constant 0 : index
      %39 = vector.load %arg5[%c0_15, %c0_16] : memref<8x128xf32, #tpu.memory_space<vmem>>, vector<8x128xf32>
      %40 = vector.shape_cast %25 : vector<16x128xf32> to vector<2x8x128xf32>
      %cst_17 = arith.constant dense<0.000000e+00> : vector<8x128xf32>
      %41 = vector.multi_reduction <add>, %40, %cst_17 [0] : vector<2x8x128xf32> to vector<8x128xf32>
      %42 = arith.addf %39, %41 : vector<8x128xf32>
      %c0_18 = arith.constant 0 : index
      %c0_19 = arith.constant 0 : index
      %43 = vector.load %arg5[%c0_18, %c0_19] : memref<8x128xf32, #tpu.memory_space<vmem>>, vector<8x128xf32>
      tpu.vector_store %arg5[%c0_18, %c0_19], %42 {strides = array<i32>} : memref<8x128xf32, #tpu.memory_space<vmem>>, vector<8x128xf32>,
    } else {
    }
    %c0_i32_13 = arith.constant 0 : i32
    %36 = arith.cmpi eq, %arg1, %c0_i32_13 : i32
    %37 = arith.extui %36 : i1 to i32
    %c0_i32_14 = arith.constant 0 : i32
    %38 = arith.cmpi ne, %37, %c0_i32_14 : i32
    scf.if %38 {
      %c0_15 = arith.constant 0 : index
      %c0_16 = arith.constant 0 : index
      %39 = vector.load %arg5[%c0_15, %c0_16] : memref<8x128xf32, #tpu.memory_space<vmem>>, vector<8x128xf32>
      %c0_17 = arith.constant 0 : index
      %c0_18 = arith.constant 0 : index
      %40 = vector.load %arg4[%c0_17, %c0_18] : memref<8x128xf32, #tpu.memory_space<vmem>>, vector<8x128xf32>
      tpu.vector_store %arg4[%c0_17, %c0_18], %39 {strides = array<i32>} : memref<8x128xf32, #tpu.memory_space<vmem>>, vector<8x128xf32>,
    } else {
    }
    return
  }
  func.func @transform_0(%arg0: i32, %arg1: i32) -> (i32, i32) {
    %c1_i32 = arith.constant 1 : i32
    %0 = arith.muli %arg0, %c1_i32 : i32
    %1 = arith.addi %0, %arg1 : i32
    %c0_i32 = arith.constant 0 : i32
    %2 = arith.minsi %1, %c0_i32 : i32
    %c0_i32_0 = arith.constant 0 : i32
    %c0_i32_1 = arith.constant 0 : i32
    return %2, %c0_i32_0 : i32, i32
  }
  func.func @transform_1(%arg0: i32, %arg1: i32) -> (i32, i32) {
    %c1_i32 = arith.constant 1 : i32
    %0 = arith.muli %arg0, %c1_i32 : i32
    %1 = arith.addi %0, %arg1 : i32
    %c0_i32 = arith.constant 0 : i32
    %2 = arith.minsi %1, %c0_i32 : i32
    %c0_i32_0 = arith.constant 0 : i32
    %c0_i32_1 = arith.constant 0 : i32
    return %2, %c0_i32_0 : i32, i32
  }
  func.func @transform_2(%arg0: i32, %arg1: i32) -> (i32, i32) {
    %c0_i32 = arith.constant 0 : i32
    %c0_i32_0 = arith.constant 0 : i32
    return %arg0, %c0_i32 : i32, i32
  }
}

</mosaic_0001>

<bundles_post_ra>
// kernel: tpu_custom_call.1
= control target key start
LH: loop header
LB: loop body
LE: loop exit
PB: predicated region body
PF: predicated region fallthrough
CT: control target
= control target key end

     0   :  { %7 = vsyncpa [#allocation4], 0  ;;  %s308_s0 = inlined_call_operand.hbm [shape: f32[16,128], index: 0, kind: input, shape index: {}]   ;;  %s309_s1 = inlined_call_operand.hbm [shape: f32[16,128], index: 1, kind: input, shape index: {}]   ;;  %s310_s2 = inlined_call_operand.hbm [shape: f32[8,128], index: 2, kind: output, shape index: {}]  }
   0x1   :  { %8 = vsyncpa [#allocation7], 0 }
   0x2   :  { %9 = vsyncpa [#allocation5], 0  ;;  %s20_s11 = sshll.u32 %s308_s0, 4  ;;  %s279_s12 = smov [#allocation3]   ;;  %s21_s11 = int_to_ptr.hbm [resolvable:$true] %s20_s11 }
   0x3   :  { %s22_s13 = sshll.u32 %s279_s12, 4  ;;  %s39_s16 = sshll.u32 %s309_s1, 4  ;;  %s23_s13 = int_to_ptr.vmem [resolvable:$true] %s22_s13  ;;  %s40_s16 = int_to_ptr.hbm [resolvable:$true] %s39_s16 }
   0x4   :  { %s280_s17 = smov 128   ;;  %s281_s18 = smov 8  }
   0x5   :  { %28 = dma.hbm_to_vmem [thread:$0]  %s21_s11, 256, %s23_s13, [#allocation4], %s280_s17, %s280_s17, %s281_s18  }
   0x6   :  { %s282_s19 = smov [#allocation6]  }
   0x7   :  { %s41_s20 = sshll.u32 %s282_s19, 4  ;;  %s42_s20 = int_to_ptr.vmem [resolvable:$true] %s41_s20 }
   0x8   :  { %47 = dma.hbm_to_vmem [thread:$0]  %s40_s16, 256, %s42_s20, [#allocation7], %s280_s17, %s280_s17, %s281_s18  }
   0x9   :  { %273 = dma.done.wait [#allocation4], 256  }
   0xa   :  { %274 = vsyncadd [#allocation4], 4294967040 }
   0xb   :  { %275 = dma.done.wait [#allocation7], 256  }
   0xc   :  { %276 = vsyncadd [#allocation7], 4294967040  ;;  %v69_v0 = vld [vmem:[#allocation3] sm:$0xff]  ;;  %v70_v1 = vld [vmem:[#allocation3 + $0x8] sm:$0xff]  ;;  %s283_s0 = smov [#allocation8]   ;;  %s169_s23 = sshll.u32 %s310_s2, 4  ;;  %s170_s23 = int_to_ptr.hbm [resolvable:$true] %s169_s23 }
   0xd   :  { %v79_v2 = vand.u32 2147483647, %v69_v0  ;;  %v80_v3 = vand.u32 2147483647, %v70_v1  ;;  %v71_v12 = vld [vmem:[#allocation6] sm:$0xff]  ;;  %v72_v15 = vld [vmem:[#allocation6 + $0x8] sm:$0xff] }
   0xe   :  { %v73_v17 = vmax.f32 %v69_v0, 0.0  ;;  %v75_v18 = vmul.f32 %v71_v12, %v69_v0  ;;  %v74_v21 = vmax.f32 %v70_v1, 0.0  ;;  %v76_v22 = vmul.f32 %v72_v15, %v70_v1  ;;  %s167_s1 = sshll.u32 %s283_s0, 4  ;;  %s168_s1 = int_to_ptr.vmem [resolvable:$true] %s167_s1 }
   0xf   :  { %v81_v4 = vsub.f32 0.0, %v79_v2  ;;  %v82_v5 = vsub.f32 0.0, %v80_v3 }
  0x10   :  { %v77_v26 = vsub.f32 %v73_v17, %v75_v18  ;;  %v78_v29 = vsub.f32 %v74_v21, %v76_v22 }
  0x11   :  { %v83_v6 = vmul.f32 1.442695, %v81_v4  ;;  %v85_v7 = vmul.f32 1.442695, %v82_v5 }
  0x13   :  { %189 = vpow2.f32 %v83_v6 }
  0x14   :  { %191 = vpow2.f32 %v85_v7 }
  0x19   :  { %v190_v8 = vpop.eup %189 }
  0x1a   :  { %v192_v9 = vpop.eup %191  ;;  %v87_v10 = vadd.f32 1.0, %v190_v8  ;;  %v90_v11 = vmul.f32 -0.5, %v190_v8  ;;  %v93_v19 = vand.u32 2147483647, %v190_v8 }
  0x1b   :  { %v96_v13 = vadd.f32 1.0, %v192_v9  ;;  %v99_v14 = vmul.f32 -0.5, %v192_v9  ;;  %v102_v23 = vand.u32 2147483647, %v192_v9 }
  0x1c   :  { %193 = vlog2.f32 %v87_v10  ;;  %v91_v16 = vadd.f32 1.0, %v90_v11  ;;  %vm94_vm0 = vcmp.lt.f32.partialorder %v93_v19, 0.0004427343 }
  0x1d   :  { %195 = vlog2.f32 %v96_v13  ;;  %v100_v20 = vadd.f32 1.0, %v99_v14  ;;  %vm103_vm1 = vcmp.lt.f32.partialorder %v102_v23, 0.0004427343 }
  0x1e   :  { %v92_v24 = vmul.f32 %v190_v8, %v91_v16 }
  0x1f   :  { %v101_v27 = vmul.f32 %v192_v9, %v100_v20 }
  0x22   :  { %v194_v25 = vpop.eup %193 }
  0x23   :  { %v196_v28 = vpop.eup %195  ;;  %v89_v30 = vmul.f32 0.6931472, %v194_v25 }
  0x24   :  { %v98_v31 = vmul.f32 0.6931472, %v196_v28 }
  0x25   :  { %v95_v32 = vsel %vm94_vm0, %v92_v24, %v89_v30 }
  0x26   :  { %v104_v33 = vsel %vm103_vm1, %v101_v27, %v98_v31  ;;  %v105_v34 = vadd.f32 %v95_v32, %v77_v26 }
  0x27   :  { %v106_v35 = vadd.f32 %v104_v33, %v78_v29 }
  0x28   :  { %v107_v36 = vsub.f32 0.0, %v105_v34 }
  0x29   :  { %v108_v37 = vsub.f32 0.0, %v106_v35 }
  0x2a   :  { %v109_v38 = vmul.f32 1.442695, %v107_v36 }
  0x2b   :  { %v111_v39 = vmul.f32 1.442695, %v108_v37 }
  0x2c   :  { %197 = vpow2.f32 %v109_v38 }
  0x2d   :  { %199 = vpow2.f32 %v111_v39 }
  0x32   :  { %v198_v40 = vpop.eup %197 }
  0x33   :  { %v200_v41 = vpop.eup %199  ;;  %v113_v42 = vsub.f32 1.0, %v198_v40 }
  0x34   :  { %v114_v43 = vsub.f32 1.0, %v200_v41 }
  0x35   :  { %v115_v44 = vmax.f32 %v113_v42, 0.0 }
  0x36   :  { %v116_v45 = vmax.f32 %v114_v43, 0.0 }
  0x37   :  { %v117_v46 = vmul.f32 %v115_v44, %v115_v44 }
  0x38   :  { %v118_v47 = vmul.f32 %v116_v45, %v116_v45 }
  0x39   :  { %v119_v48 = vmul.f32 %v117_v46, %v105_v34 }
  0x3a   :  { %v120_v49 = vmul.f32 %v118_v47, %v106_v35 }
  0x3c   :  { %v154_v50 = vadd.f32 %v120_v49, %v119_v48 }
  0x3e   :  { %161 = vst [vmem:[#allocation8] sm:$0xff] %v154_v50 }
  0x3f   :  { %172 = dma.vmem_to_hbm [thread:$0]  %s168_s1, 128, %s170_s23, [#allocation5]  }
  0x40   :  { %277 = dma.done.wait [#allocation5], 128  }
  0x41   :  { %278 = vsyncadd [#allocation5], 4294967168 }
  0x42   :  { %177 = vsyncpa [#allocation4], 1 }
  0x43   :  { %178 = vsyncpa [#allocation7], 1 }
  0x44   :  { %179 = vsyncpa [#allocation5], 1 }

</bundles_post_ra>
